<compile_context>
chip_gen: v7x
topology: tpu7x:2x2x1
jax: 0.10.0
libtpu: 0.0.40
codegen_flags: <defaults>
</compile_context>

<pallas_src>
from functools import partial

import jax
import jax.numpy as jnp
from jax import lax
from jax.experimental import pallas as pl
from jax.experimental.pallas import tpu as pltpu


# ----------------------------------------------------------------------------
# Small helpers
# ----------------------------------------------------------------------------
def _round_up(x, m):
    return (x + m - 1) // m * m


def _level_vmem_bytes(th, W, Wp, Wq, cin, cout, merge):
    """Rough per-block VMEM estimate (inputs double-buffered + scratch + temps)."""
    hc = th // 2
    blocks = (th * Wp * cin * 2 + 2 * Wp * cin * 2       # halo'd input blocks (bf16)
              + th * W * cout * 4)                        # output block (f32)
    if merge:
        blocks += (hc + 2) * Wp * cout * 4                # coarse top-down blocks (f32)
    weights = cin * cout * 2 + 9 * cout * cout * 2 + 2 * cout * 4
    scratch = (th + 2) * Wp * (cin + cout) * 2            # input + lat slabs (bf16)
    if merge:
        scratch += (hc + 2) * Wp * cout * 4
    interm = (th + 2) * Wp * cout * 4 + th * Wq * cout * 4
    return 2 * blocks + weights + scratch + interm


def _choose_row_tile(H, W, Wp, Wq, cin, cout, merge,
                     max_rows=8, budget_bytes=24 << 20):
    """Largest row tile that divides H, keeps the halo sub-blocks aligned and
    fits a v7x-friendly VMEM budget (24 MiB of the 32 MiB default scope)."""
    mult = 4 if merge else 2
    for t in range(min(H, max_rows), 0, -1):
        if H % t or t % mult:
            continue
        if _level_vmem_bytes(t, W, Wp, Wq, cin, cout, merge) <= budget_bytes:
            return t
    # TODO(synk): also tile the width for extremely wide production maps; a
    # full-width row slab always fits for the shapes exercised here.
    assert H % mult == 0, "fused merge level needs a row tile divisible by 4"
    return H


# ----------------------------------------------------------------------------
# Fused FPN level kernel:  conv1x1 (+ upsample-add)  ->  conv3x3, one block =
# (one batch element) x (th output rows) x (full width).
# ----------------------------------------------------------------------------
def _fpn_level_kernel(*refs, th, W, Wq, H, merge):
    if merge:
        (xa_ref, xb_ref, ca_ref, cb_ref, wlat_ref, blat_ref, w3_ref, b3_ref,
         o_ref, xs_ref, cs_ref, lat_ref) = refs
    else:
        (xa_ref, xb_ref, wlat_ref, blat_ref, w3_ref, b3_ref,
         o_ref, xs_ref, lat_ref) = refs
        ca_ref = cb_ref = cs_ref = None

    rb = pl.program_id(1)
    Wp = xs_ref.shape[1]                # padded slab width (multiple of 8)
    cin = xs_ref.shape[2]
    cout = o_ref.shape[2]

    # ---- assemble the (th+2)-row halo'd input slab from the two aligned
    # BlockSpec windows (rows [r*th, r*th+th) and [(r+1)*th, (r+1)*th+2)) -----
    xs_ref[0:th, :, :] = xa_ref[...]
    xs_ref[th:th + 2, :, :] = xb_ref[...]

    # ---- 1x1 lateral conv over the whole slab (bf16 MXU, f32 accumulation) --
    xf = xs_ref[...].reshape((th + 2) * Wp, cin)
    lat = jnp.dot(xf, wlat_ref[...], preferred_element_type=jnp.float32)
    lat = (lat + blat_ref[...]).reshape(th + 2, Wp, cout)

    # ---- fused nearest-neighbour 2x upsample + add of the coarse map --------
    if merge:
        hc = th // 2
        cs_ref[0:hc, :, :] = ca_ref[...]
        cs_ref[hc:hc + 2, :, :] = cb_ref[...]
        cs = cs_ref[...]                                      # (hc+2, Wp, cout) f32
        # Row duplication is a free major-dim relabel; slice aligns it with the
        # halo'd lat slab (slab row s needs coarse slab row (s+1)//2).
        cdup = jnp.broadcast_to(cs[:, None], (hc + 2, 2, Wp, cout))
        cdup = cdup.reshape(th + 4, Wp, cout)
        lat = lat + cdup[1:th + 3]

    # ---- zero the 3x3 conv padding ring (and alignment columns) -------------
    row = lax.broadcasted_iota(jnp.int32, (th + 2, Wp, cout), 0) + rb * th
    col = lax.broadcasted_iota(jnp.int32, (th + 2, Wp, cout), 1)
    interior = (row >= 1) & (row <= H) & (col >= 1) & (col <= W)
    lat_ref[...] = jnp.where(interior, lat, 0.0).astype(jnp.bfloat16)

    # ---- 3x3 conv: 9 accumulated MXU dots over shifted slices (no im2col) ---
    acc = jnp.zeros((th * Wq, cout), jnp.float32)
    for dy in range(3):
        for dx in range(3):
            tap = lat_ref[dy:dy + th, dx:dx + Wq, :].reshape(th * Wq, cout)
            acc = acc + jnp.dot(tap, w3_ref[dy * 3 + dx],
                                preferred_element_type=jnp.float32)
    acc = (acc + b3_ref[...]).reshape(th, Wq, cout)
    o_ref[...] = acc[:, :W, :]


def fpn_level(x_nhwc, wlat, blat, w3, b3, coarse=None, *, max_row_tile=8):
    """One FPN top-down level, fully fused into a single pallas_call."""
    N, H, W, cin = x_nhwc.shape
    cout = wlat.shape[-1]
    merge = coarse is not None

    Wq = _round_up(W, 8)           # aligned tap width (sublane multiple)
    Wp = Wq + 8                    # padded slab width: >= W+2, >= Wq+2, 8-aligned
    th = _choose_row_tile(H, W, Wp, Wq, cin, cout, merge, max_rows=max_row_tile)
    n_rb = H // th

    # conv zero-padding + sublane alignment padding (cheap XLA glue, not im2col)
    xp = jnp.pad(x_nhwc.astype(jnp.bfloat16),
                 ((0, 0), (1, 1), (1, Wp - W - 1), (0, 0)))

    args = [xp, xp]
    in_specs = [
        pl.BlockSpec((None, th, Wp, cin), lambda b, r: (b, r, 0, 0)),
        # the 2 rows just below the block above -> together a (th+2)-row halo
        pl.BlockSpec((None, 2, Wp, cin),
                     lambda b, r, s=th // 2: (b, (r + 1) * s, 0, 0)),
    ]
    scratch = [pltpu.VMEM((th + 2, Wp, cin), jnp.bfloat16)]

    if merge:
        assert coarse.shape == (N, H // 2, W // 2, cout), coarse.shape
        assert th % 4 == 0
        hc = th // 2
        # Column duplication stays in glue on the (small) coarse map; row
        # duplication and the add are fused into the kernel.
        cw_ = jnp.repeat(coarse, 2, axis=2)                     # (N, H/2, W, cout)
        cp = jnp.pad(cw_, ((0, 0), (1, 1), (1, Wp - W - 1), (0, 0)))
        args += [cp, cp]
        in_specs += [
            pl.BlockSpec((None, hc, Wp, cout), lambda b, r: (b, r, 0, 0)),
            pl.BlockSpec((None, 2, Wp, cout),
                         lambda b, r, s=hc // 2: (b, (r + 1) * s, 0, 0)),
        ]
        scratch.append(pltpu.VMEM((hc + 2, Wp, cout), jnp.float32))
    scratch.append(pltpu.VMEM((th + 2, Wp, cout), jnp.bfloat16))

    args += [wlat.astype(jnp.bfloat16),
             blat.reshape(1, cout).astype(jnp.float32),
             w3.reshape(9, cout, cout).astype(jnp.bfloat16),
             b3.reshape(1, cout).astype(jnp.float32)]
    in_specs += [
        pl.BlockSpec((cin, cout), lambda b, r: (0, 0)),
        pl.BlockSpec((1, cout), lambda b, r: (0, 0)),
        pl.BlockSpec((9, cout, cout), lambda b, r: (0, 0, 0)),
        pl.BlockSpec((1, cout), lambda b, r: (0, 0)),
    ]

    vmem_limit = int(min(max(_level_vmem_bytes(th, W, Wp, Wq, cin, cout, merge)
                             + (4 << 20), 8 << 20), 32 << 20))

    return pl.pallas_call(
        partial(_fpn_level_kernel, th=th, W=W, Wq=Wq, H=H, merge=merge),
        grid=(N, n_rb),
        in_specs=in_specs,
        out_specs=pl.BlockSpec((None, th, W, cout), lambda b, r: (b, r, 0, 0)),
        out_shape=jax.ShapeDtypeStruct((N, H, W, cout), jnp.float32),
        scratch_shapes=scratch,
        compiler_params=pltpu.CompilerParams(
            dimension_semantics=("parallel", "parallel"),   # batch x row-blocks
            vmem_limit_bytes=vmem_limit),
    )(*args)


# ----------------------------------------------------------------------------
# RetinaNet extra stages (P6/P7): 3x3 stride-2 conv.  These maps are tiny
# (a few rows), latency-bound; taps are a few KB of glue, ReLU fused in-kernel.
# ----------------------------------------------------------------------------
def _conv3x3_s2_kernel(xt_ref, w_ref, b_ref, o_ref, *, relu_x):
    m, cout = o_ref.shape
    acc = jnp.zeros((m, cout), jnp.float32)
    for t in range(9):
        xt = xt_ref[t]                       # (m, cin) bf16
        if relu_x:                           # fused nn.ReLU on the conv input
            xt = jnp.maximum(xt, 0)
        acc = acc + jnp.dot(xt, w_ref[t], preferred_element_type=jnp.float32)
    o_ref[...] = acc + b_ref[...]


def conv3x3_stride2(x_nhwc, w, b, *, relu_x):
    N, H, W, cin = x_nhwc.shape
    cout = w.shape[-1]
    Ho = (H - 1) // 2 + 1
    Wo = (W - 1) // 2 + 1
    xpad = jnp.pad(x_nhwc.astype(jnp.bfloat16), ((0, 0), (1, 1), (1, 1), (0, 0)))
    taps = [xpad[:, dy:dy + 2 * (Ho - 1) + 1:2, dx:dx + 2 * (Wo - 1) + 1:2, :]
            for dy in range(3) for dx in range(3)]
    xt = jnp.stack(taps, axis=1).reshape(N, 9, Ho * Wo, cin)

    out = pl.pallas_call(
        partial(_conv3x3_s2_kernel, relu_x=relu_x),
        grid=(N,),
        in_specs=[
            pl.BlockSpec((None, 9, Ho * Wo, cin), lambda b: (b, 0, 0, 0)),
            pl.BlockSpec((9, cin, cout), lambda b: (0, 0, 0)),
            pl.BlockSpec((1, cout), lambda b: (0, 0)),
        ],
        out_specs=pl.BlockSpec((None, Ho * Wo, cout), lambda b: (b, 0, 0)),
        out_shape=jax.ShapeDtypeStruct((N, Ho * Wo, cout), jnp.float32),
        compiler_params=pltpu.CompilerParams(
            dimension_semantics=("parallel",)),
    )(xt, w.reshape(9, cin, cout).astype(jnp.bfloat16),
      b.reshape(1, cout).astype(jnp.float32))
    return out.reshape(N, Ho, Wo, cout)


# ----------------------------------------------------------------------------
# FPN module (parameters initialized deterministically in-script).
# ----------------------------------------------------------------------------
class FPNPallas:
    def __init__(self, upsample_stages, downsample_stages,
                 out_feature_names=None, out_features=256, seed=0):
        self._num_us = len(upsample_stages)
        self._num_ds = len(downsample_stages)
        self.out_features = out_features
        key = jax.random.PRNGKey(seed)
        total = self._num_us + self._num_ds
        up_start = total - self._num_us

        def conv3_params(k, cin, cout):
            kw, kb = jax.random.split(k)
            w = jax.random.normal(kw, (3, 3, cin, cout), jnp.float32)
            w = (w * (2.0 / (9 * cin)) ** 0.5).astype(jnp.bfloat16)
            b = jax.random.normal(kb, (cout,), jnp.float32) * 0.1
            return w, b

        def conv1_params(k, cin, cout):
            kw, kb = jax.random.split(k)
            w = jax.random.normal(kw, (cin, cout), jnp.float32)
            w = (w * (2.0 / cin) ** 0.5).astype(jnp.bfloat16)
            b = jax.random.normal(kb, (cout,), jnp.float32) * 0.1
            return w, b

        # RetinaNet extra stages (P6/P7): conv3x3 stride 2.
        self.upsample_stage_names, self.upsample_params = [], []
        for i, cin in enumerate(upsample_stages):
            key, sub = jax.random.split(key)
            self.upsample_params.append(conv3_params(sub, cin, out_features))
            self.upsample_stage_names.append('upsample_fpn' + str(up_start + i))

        # Standard FPN top-down stages: 1x1 lateral (+merge) followed by 3x3.
        self.stage_names, self.lat_params, self.conv_params = [], [], []
        for i, cin in enumerate(downsample_stages):
            key, k_lat, k_conv = jax.random.split(key, 3)
            self.lat_params.append(conv1_params(k_lat, cin, out_features))
            self.conv_params.append(conv3_params(k_conv, out_features, out_features))
            self.stage_names.append('fpn' + str(up_start - (i + 1)))

        if out_feature_names is None:
            out_feature_names = self.upsample_stage_names + self.stage_names
        self.out_feature_names = out_feature_names

    def __call__(self, inputs_nchw):
        assert len(inputs_nchw) == self._num_ds
        inputs = [jnp.transpose(x, (0, 2, 3, 1)) for x in inputs_nchw]  # -> NHWC
        outputs = {}

        # ---- RetinaNet extra (stride-2) stages ------------------------------
        out = inputs[-1]
        for i, (name, (w, b)) in enumerate(zip(self.upsample_stage_names,
                                               self.upsample_params)):
            out = conv3x3_stride2(out, w, b, relu_x=(i != 0))
            if i == 0 or name in self.out_feature_names:
                outputs[name] = out

        # ---- standard FPN top-down path: one fused kernel per level ---------
        rev_idxs = list(range(len(inputs) - 1, -1, -1))
        out = None
        for i, name, (lw, lb), (cw, cb) in zip(rev_idxs, self.stage_names,
                                               self.lat_params, self.conv_params):
            coarse = None if i == rev_idxs[0] else out
            out = fpn_level(inputs[i], lw, lb, cw, cb, coarse=coarse)
            if name in self.out_feature_names:
                outputs[name] = out

        # back to NCHW to match the PyTorch output convention
        return {k: jnp.transpose(v, (0, 3, 1, 2)) for k, v in outputs.items()}

    # ---- pure-JAX reference (XLA conv) with matching bf16/f32 precision -----
    def reference(self, inputs_nchw):
        def rconv3(x, w, b, stride=1, relu_x=False):
            xb = x.astype(jnp.bfloat16)
            if relu_x:
                xb = jnp.maximum(xb, 0)
            y = lax.conv_general_dilated(
                xb, w, window_strides=(stride, stride), padding=[(1, 1), (1, 1)],
                dimension_numbers=('NHWC', 'HWIO', 'NHWC'),
                preferred_element_type=jnp.float32)
            return y + b

        def rconv1(x, w, b, add=None):
            y = jnp.einsum('nhwc,cd->nhwd', x.astype(jnp.bfloat16), w,
                           preferred_element_type=jnp.float32) + b
            return y if add is None else y + add

        def up2(x):
            return jnp.repeat(jnp.repeat(x, 2, axis=1), 2, axis=2)

        inputs = [jnp.transpose(x, (0, 2, 3, 1)) for x in inputs_nchw]
        outputs = {}
        out = inputs[-1]
        for i, (name, (w, b)) in enumerate(zip(self.upsample_stage_names,
                                               self.upsample_params)):
            out = rconv3(out, w, b, stride=2, relu_x=(i != 0))
            outputs[name] = out
        rev_idxs = list(range(len(inputs) - 1, -1, -1))
        for i, name, (lw, lb), (cw, cb) in zip(rev_idxs, self.stage_names,
                                               self.lat_params, self.conv_params):
            if i == rev_idxs[0]:
                lat = rconv1(inputs[i], lw, lb)
            else:
                lat = rconv1(inputs[i], lw, lb, add=up2(out))
            out = rconv3(lat, cw, cb)
            outputs[name] = out
        return {k: jnp.transpose(v, (0, 3, 1, 2)) for k, v in outputs.items()}


# ----------------------------------------------------------------------------
if __name__ == "__main__":
    key = jax.random.PRNGKey(0)
    k1, k2, k3 = jax.random.split(key, 3)
    # Multi-scale backbone features, ASC order (lowest -> highest level), NCHW.
    c3 = jax.random.normal(k1, (2, 16, 16, 16), jnp.float32)
    c4 = jax.random.normal(k2, (2, 32, 8, 8), jnp.float32)
    c5 = jax.random.normal(k3, (2, 64, 4, 4), jnp.float32)

    out_features = 128   # multiple of 128 -> lane-dense output stores
    fpn = FPNPallas(
        upsample_stages=[64, out_features],   # P6 from C5, P7 from relu(P6)
        downsample_stages=[64, 32, 16],       # DESC: C5, C4, C3 channels
        out_features=out_features,
        seed=0,
    )

    outs = fpn([c3, c4, c5])
    for v in outs.values():
        jax.block_until_ready(v)

    refs = fpn.reference([c3, c4, c5])
    for name in outs:
        assert outs[name].shape == refs[name].shape, name
        assert jnp.allclose(outs[name], refs[name], rtol=2e-3, atol=2e-3), name

    print("KERNEL_OK")
</pallas_src>

<mosaic_0001>
module attributes {stable_mosaic.version = 11 : i64} {
  func.func @_conv3x3_s2_kernel(%arg0: i32, %arg1: memref<1x9x4x64xbf16, #tpu.memory_space<vmem>>, %arg2: memref<9x64x128xbf16, #tpu.memory_space<vmem>>, %arg3: memref<1x128xf32, #tpu.memory_space<vmem>>, %arg4: memref<1x4x128xf32, #tpu.memory_space<vmem>>) attributes {dimension_semantics = [#tpu.dimension_semantics<parallel>], iteration_bounds = array<i64: 2>, scalar_prefetch = 0 : i64, scratch_operands = 0 : i64, tpu.core_type = #tpu.core_type<tc>, window_params = [{transform_indices = @transform_0, window_bounds = array<i64: 1, 9, 4, 64>}, {pipeline_mode = #tpu.pipeline_mode<synchronous>, transform_indices = @transform_1, window_bounds = array<i64: 9, 64, 128>}, {pipeline_mode = #tpu.pipeline_mode<synchronous>, transform_indices = @transform_2, window_bounds = array<i64: 1, 128>}, {transform_indices = @transform_3, window_bounds = array<i64: 1, 4, 128>}]} {
    %cst = arith.constant 0.000000e+00 : f32
    %0 = vector.broadcast %cst : f32 to vector<4x128xf32>
    %c0 = arith.constant 0 : index
    %c0_0 = arith.constant 0 : index
    %c0_1 = arith.constant 0 : index
    %c0_2 = arith.constant 0 : index
    %1 = vector.load %arg1[%c0, %c0_0, %c0_1, %c0_2] : memref<1x9x4x64xbf16, #tpu.memory_space<vmem>>, vector<1x1x4x64xbf16>
    %2 = vector.shape_cast %1 : vector<1x1x4x64xbf16> to vector<4x64xbf16>
    %c0_3 = arith.constant 0 : index
    %c0_4 = arith.constant 0 : index
    %c0_5 = arith.constant 0 : index
    %3 = vector.load %arg2[%c0_3, %c0_4, %c0_5] : memref<9x64x128xbf16, #tpu.memory_space<vmem>>, vector<1x64x128xbf16>
    %4 = vector.shape_cast %3 : vector<1x64x128xbf16> to vector<64x128xbf16>
    %cst_6 = arith.constant dense<0.000000e+00> : vector<4x128xf32>
    %5 = tpu.matmul %2, %4, %cst_6 {dimension_numbers = #tpu.dot_dimension_numbers<[1], [0], [0], [1], [0, 0, 1, 1], [], []>} : vector<4x64xbf16>, vector<64x128xbf16>, vector<4x128xf32> -> vector<4x128xf32>
    %6 = arith.addf %0, %5 : vector<4x128xf32>
    %c0_7 = arith.constant 0 : index
    %c1 = arith.constant 1 : index
    %c0_8 = arith.constant 0 : index
    %c0_9 = arith.constant 0 : index
    %7 = vector.load %arg1[%c0_7, %c1, %c0_8, %c0_9] : memref<1x9x4x64xbf16, #tpu.memory_space<vmem>>, vector<1x1x4x64xbf16>
    %8 = vector.shape_cast %7 : vector<1x1x4x64xbf16> to vector<4x64xbf16>
    %c1_10 = arith.constant 1 : index
    %c0_11 = arith.constant 0 : index
    %c0_12 = arith.constant 0 : index
    %9 = vector.load %arg2[%c1_10, %c0_11, %c0_12] : memref<9x64x128xbf16, #tpu.memory_space<vmem>>, vector<1x64x128xbf16>
    %10 = vector.shape_cast %9 : vector<1x64x128xbf16> to vector<64x128xbf16>
    %cst_13 = arith.constant dense<0.000000e+00> : vector<4x128xf32>
    %11 = tpu.matmul %8, %10, %cst_13 {dimension_numbers = #tpu.dot_dimension_numbers<[1], [0], [0], [1], [0, 0, 1, 1], [], []>} : vector<4x64xbf16>, vector<64x128xbf16>, vector<4x128xf32> -> vector<4x128xf32>
    %12 = arith.addf %6, %11 : vector<4x128xf32>
    %c0_14 = arith.constant 0 : index
    %c2 = arith.constant 2 : index
    %c0_15 = arith.constant 0 : index
    %c0_16 = arith.constant 0 : index
    %13 = vector.load %arg1[%c0_14, %c2, %c0_15, %c0_16] : memref<1x9x4x64xbf16, #tpu.memory_space<vmem>>, vector<1x1x4x64xbf16>
    %14 = vector.shape_cast %13 : vector<1x1x4x64xbf16> to vector<4x64xbf16>
    %c2_17 = arith.constant 2 : index
    %c0_18 = arith.constant 0 : index
    %c0_19 = arith.constant 0 : index
    %15 = vector.load %arg2[%c2_17, %c0_18, %c0_19] : memref<9x64x128xbf16, #tpu.memory_space<vmem>>, vector<1x64x128xbf16>
    %16 = vector.shape_cast %15 : vector<1x64x128xbf16> to vector<64x128xbf16>
    %cst_20 = arith.constant dense<0.000000e+00> : vector<4x128xf32>
    %17 = tpu.matmul %14, %16, %cst_20 {dimension_numbers = #tpu.dot_dimension_numbers<[1], [0], [0], [1], [0, 0, 1, 1], [], []>} : vector<4x64xbf16>, vector<64x128xbf16>, vector<4x128xf32> -> vector<4x128xf32>
    %18 = arith.addf %12, %17 : vector<4x128xf32>
    %c0_21 = arith.constant 0 : index
    %c3 = arith.constant 3 : index
    %c0_22 = arith.constant 0 : index
    %c0_23 = arith.constant 0 : index
    %19 = vector.load %arg1[%c0_21, %c3, %c0_22, %c0_23] : memref<1x9x4x64xbf16, #tpu.memory_space<vmem>>, vector<1x1x4x64xbf16>
    %20 = vector.shape_cast %19 : vector<1x1x4x64xbf16> to vector<4x64xbf16>
    %c3_24 = arith.constant 3 : index
    %c0_25 = arith.constant 0 : index
    %c0_26 = arith.constant 0 : index
    %21 = vector.load %arg2[%c3_24, %c0_25, %c0_26] : memref<9x64x128xbf16, #tpu.memory_space<vmem>>, vector<1x64x128xbf16>
    %22 = vector.shape_cast %21 : vector<1x64x128xbf16> to vector<64x128xbf16>
    %cst_27 = arith.constant dense<0.000000e+00> : vector<4x128xf32>
    %23 = tpu.matmul %20, %22, %cst_27 {dimension_numbers = #tpu.dot_dimension_numbers<[1], [0], [0], [1], [0, 0, 1, 1], [], []>} : vector<4x64xbf16>, vector<64x128xbf16>, vector<4x128xf32> -> vector<4x128xf32>
    %24 = arith.addf %18, %23 : vector<4x128xf32>
    %c0_28 = arith.constant 0 : index
    %c4 = arith.constant 4 : index
    %c0_29 = arith.constant 0 : index
    %c0_30 = arith.constant 0 : index
    %25 = vector.load %arg1[%c0_28, %c4, %c0_29, %c0_30] : memref<1x9x4x64xbf16, #tpu.memory_space<vmem>>, vector<1x1x4x64xbf16>
    %26 = vector.shape_cast %25 : vector<1x1x4x64xbf16> to vector<4x64xbf16>
    %c4_31 = arith.constant 4 : index
    %c0_32 = arith.constant 0 : index
    %c0_33 = arith.constant 0 : index
    %27 = vector.load %arg2[%c4_31, %c0_32, %c0_33] : memref<9x64x128xbf16, #tpu.memory_space<vmem>>, vector<1x64x128xbf16>
    %28 = vector.shape_cast %27 : vector<1x64x128xbf16> to vector<64x128xbf16>
    %cst_34 = arith.constant dense<0.000000e+00> : vector<4x128xf32>
    %29 = tpu.matmul %26, %28, %cst_34 {dimension_numbers = #tpu.dot_dimension_numbers<[1], [0], [0], [1], [0, 0, 1, 1], [], []>} : vector<4x64xbf16>, vector<64x128xbf16>, vector<4x128xf32> -> vector<4x128xf32>
    %30 = arith.addf %24, %29 : vector<4x128xf32>
    %c0_35 = arith.constant 0 : index
    %c5 = arith.constant 5 : index
    %c0_36 = arith.constant 0 : index
    %c0_37 = arith.constant 0 : index
    %31 = vector.load %arg1[%c0_35, %c5, %c0_36, %c0_37] : memref<1x9x4x64xbf16, #tpu.memory_space<vmem>>, vector<1x1x4x64xbf16>
    %32 = vector.shape_cast %31 : vector<1x1x4x64xbf16> to vector<4x64xbf16>
    %c5_38 = arith.constant 5 : index
    %c0_39 = arith.constant 0 : index
    %c0_40 = arith.constant 0 : index
    %33 = vector.load %arg2[%c5_38, %c0_39, %c0_40] : memref<9x64x128xbf16, #tpu.memory_space<vmem>>, vector<1x64x128xbf16>
    %34 = vector.shape_cast %33 : vector<1x64x128xbf16> to vector<64x128xbf16>
    %cst_41 = arith.constant dense<0.000000e+00> : vector<4x128xf32>
    %35 = tpu.matmul %32, %34, %cst_41 {dimension_numbers = #tpu.dot_dimension_numbers<[1], [0], [0], [1], [0, 0, 1, 1], [], []>} : vector<4x64xbf16>, vector<64x128xbf16>, vector<4x128xf32> -> vector<4x128xf32>
    %36 = arith.addf %30, %35 : vector<4x128xf32>
    %c0_42 = arith.constant 0 : index
    %c6 = arith.constant 6 : index
    %c0_43 = arith.constant 0 : index
    %c0_44 = arith.constant 0 : index
    %37 = vector.load %arg1[%c0_42, %c6, %c0_43, %c0_44] : memref<1x9x4x64xbf16, #tpu.memory_space<vmem>>, vector<1x1x4x64xbf16>
    %38 = vector.shape_cast %37 : vector<1x1x4x64xbf16> to vector<4x64xbf16>
    %c6_45 = arith.constant 6 : index
    %c0_46 = arith.constant 0 : index
    %c0_47 = arith.constant 0 : index
    %39 = vector.load %arg2[%c6_45, %c0_46, %c0_47] : memref<9x64x128xbf16, #tpu.memory_space<vmem>>, vector<1x64x128xbf16>
    %40 = vector.shape_cast %39 : vector<1x64x128xbf16> to vector<64x128xbf16>
    %cst_48 = arith.constant dense<0.000000e+00> : vector<4x128xf32>
    %41 = tpu.matmul %38, %40, %cst_48 {dimension_numbers = #tpu.dot_dimension_numbers<[1], [0], [0], [1], [0, 0, 1, 1], [], []>} : vector<4x64xbf16>, vector<64x128xbf16>, vector<4x128xf32> -> vector<4x128xf32>
    %42 = arith.addf %36, %41 : vector<4x128xf32>
    %c0_49 = arith.constant 0 : index
    %c7 = arith.constant 7 : index
    %c0_50 = arith.constant 0 : index
    %c0_51 = arith.constant 0 : index
    %43 = vector.load %arg1[%c0_49, %c7, %c0_50, %c0_51] : memref<1x9x4x64xbf16, #tpu.memory_space<vmem>>, vector<1x1x4x64xbf16>
    %44 = vector.shape_cast %43 : vector<1x1x4x64xbf16> to vector<4x64xbf16>
    %c7_52 = arith.constant 7 : index
    %c0_53 = arith.constant 0 : index
    %c0_54 = arith.constant 0 : index
    %45 = vector.load %arg2[%c7_52, %c0_53, %c0_54] : memref<9x64x128xbf16, #tpu.memory_space<vmem>>, vector<1x64x128xbf16>
    %46 = vector.shape_cast %45 : vector<1x64x128xbf16> to vector<64x128xbf16>
    %cst_55 = arith.constant dense<0.000000e+00> : vector<4x128xf32>
    %47 = tpu.matmul %44, %46, %cst_55 {dimension_numbers = #tpu.dot_dimension_numbers<[1], [0], [0], [1], [0, 0, 1, 1], [], []>} : vector<4x64xbf16>, vector<64x128xbf16>, vector<4x128xf32> -> vector<4x128xf32>
    %48 = arith.addf %42, %47 : vector<4x128xf32>
    %c0_56 = arith.constant 0 : index
    %c8 = arith.constant 8 : index
    %c0_57 = arith.constant 0 : index
    %c0_58 = arith.constant 0 : index
    %49 = vector.load %arg1[%c0_56, %c8, %c0_57, %c0_58] : memref<1x9x4x64xbf16, #tpu.memory_space<vmem>>, vector<1x1x4x64xbf16>
    %50 = vector.shape_cast %49 : vector<1x1x4x64xbf16> to vector<4x64xbf16>
    %c8_59 = arith.constant 8 : index
    %c0_60 = arith.constant 0 : index
    %c0_61 = arith.constant 0 : index
    %51 = vector.load %arg2[%c8_59, %c0_60, %c0_61] : memref<9x64x128xbf16, #tpu.memory_space<vmem>>, vector<1x64x128xbf16>
    %52 = vector.shape_cast %51 : vector<1x64x128xbf16> to vector<64x128xbf16>
    %cst_62 = arith.constant dense<0.000000e+00> : vector<4x128xf32>
    %53 = tpu.matmul %50, %52, %cst_62 {dimension_numbers = #tpu.dot_dimension_numbers<[1], [0], [0], [1], [0, 0, 1, 1], [], []>} : vector<4x64xbf16>, vector<64x128xbf16>, vector<4x128xf32> -> vector<4x128xf32>
    %54 = arith.addf %48, %53 : vector<4x128xf32>
    %c0_63 = arith.constant 0 : index
    %c0_64 = arith.constant 0 : index
    %55 = vector.load %arg3[%c0_63, %c0_64] : memref<1x128xf32, #tpu.memory_space<vmem>>, vector<1x128xf32>
    %56 = vector.broadcast %55 : vector<1x128xf32> to vector<4x128xf32>
    %57 = arith.addf %54, %56 : vector<4x128xf32>
    %c0_65 = arith.constant 0 : index
    %c0_66 = arith.constant 0 : index
    %c0_67 = arith.constant 0 : index
    %58 = vector.load %arg4[%c0_65, %c0_66, %c0_67] : memref<1x4x128xf32, #tpu.memory_space<vmem>>, vector<1x4x128xf32>
    %59 = vector.shape_cast %58 : vector<1x4x128xf32> to vector<4x128xf32>
    %60 = vector.shape_cast %57 : vector<4x128xf32> to vector<1x4x128xf32>
    tpu.vector_store %arg4[%c0_65, %c0_66, %c0_67], %60 {strides = array<i32>} : memref<1x4x128xf32, #tpu.memory_space<vmem>>, vector<1x4x128xf32>,
    return
  }
  func.func @transform_0(%arg0: i32) -> (i32, i32, i32, i32) {
    %c0_i32 = arith.constant 0 : i32
    %c0_i32_0 = arith.constant 0 : i32
    %c0_i32_1 = arith.constant 0 : i32
    %c0_i32_2 = arith.constant 0 : i32
    return %arg0, %c0_i32, %c0_i32_0, %c0_i32_1 : i32, i32, i32, i32
  }
  func.func @transform_1(%arg0: i32) -> (i32, i32, i32) {
    %c0_i32 = arith.constant 0 : i32
    %c0_i32_0 = arith.constant 0 : i32
    %c0_i32_1 = arith.constant 0 : i32
    %c0_i32_2 = arith.constant 0 : i32
    return %c0_i32, %c0_i32_0, %c0_i32_1 : i32, i32, i32
  }
  func.func @transform_2(%arg0: i32) -> (i32, i32) {
    %c0_i32 = arith.constant 0 : i32
    %c0_i32_0 = arith.constant 0 : i32
    %c0_i32_1 = arith.constant 0 : i32
    return %c0_i32, %c0_i32_0 : i32, i32
  }
  func.func @transform_3(%arg0: i32) -> (i32, i32, i32) {
    %c0_i32 = arith.constant 0 : i32
    %c0_i32_0 = arith.constant 0 : i32
    %c0_i32_1 = arith.constant 0 : i32
    return %arg0, %c0_i32, %c0_i32_0 : i32, i32, i32
  }
}

</mosaic_0001>

<bundles_post_ra>
// kernel: tpu_custom_call.1
= control target key start
LH: loop header
LB: loop body
LE: loop exit
PB: predicated region body
PF: predicated region fallthrough
CT: control target
= control target key end

     0   :  { %8 = vsyncpa [#allocation3], 0  ;;  %s1773_s0 = inlined_call_operand.hbm [shape: bf16[2,9,4,64], index: 0, kind: input, shape index: {}]   ;;  %s1774_s1 = inlined_call_operand.hbm [shape: bf16[9,64,128], index: 1, kind: input, shape index: {}]   ;;  %s1775_s2 = inlined_call_operand.vmem [shape: f32[1,128], index: 2, kind: input, shape index: {}]   ;;  %s1776_s3 = inlined_call_operand.hbm [shape: f32[2,4,128], index: 3, kind: output, shape index: {}]  }
   0x1   :  { %10 = vsyncpa [#allocation3 + $0x1], 0 }
   0x2   :  { %11 = vsyncpa [#allocation6], 0 }
   0x3   :  { %12 = vsyncpa [#allocation4], 0 }
   0x4   :  { %14 = vsyncpa [#allocation4 + $0x1], 0  ;;  %s1496_s12 = smov 0   ;;  %s1498_s13 = smov 0  }
   0x5   :  { %s1500_s14 = smov 0   ;;  %s1502_s15 = smov 0  }
   0x6 LB: > { %s1517_s16 = sadd.s32 4294967295, %s1465_s15   ;;  %s1016_s17 = sadd.s32 4294967294, %s1465_s15   ;;  %s1465_s15 = sphi %s1502_s15, %s1796_s15   ;;  %s1461_s14 = sphi %s1500_s14, %s1795_s14   ;;  %s1457_s13 = sphi %s1498_s13, %s1794_s13   ;;  %s1453_s12 = sphi %s1496_s12, %s1793_s12  }
   0x7   : > { %p40_p0 = scmp.ne.s32.totalorder %s1457_s13, %s1453_s12  ;;  %p1777_p1 = scmp.eq.s32.totalorder %s1517_s16, 0 }
   0x8   : > { %p112_p3 = scmp.eq.s32.totalorder %s1016_s17, 1  ;;  %p1017_p5 = scmp.ge.s32.totalorder %s1465_s15, 1 }
   0x9   : > { %p1526_p4 = por %p1777_p1, %p40_p0  ;;  %p119_p7 = scmp.lt.s32.totalorder %s1465_s15, 3 }
   0xa   : > { %p1531_p6 = por %p112_p3, %p40_p0  ;;  %s1467_s21 = smov [#allocation5]  }
   0xb   : > { %s1780_s18 = scalar_select %p1526_p4, 1, 0 }
   0xc   : > { %s1781_s19 = scalar_select %p1531_p6, 1, 0 }
   0xd   : > { %p1536_p8 = pnand %p1017_p5, %p119_p7  ;;  %s131_s22 = sshll.u32 %s1467_s21, 4  ;;  %s1540_s22 = int_to_ptr.vmem [resolvable:$true] %s131_s22 }
   0xe   : > { %s1552_s24 = sadd.s32 1, %s1465_s15   ;;  %s27_s25 = sadd.s32 1, %s1461_s14 }
   0xf   : > { %s1782_s20 = scalar_select %p1536_p8, 1, 0 }
  0x10   : > { %p1246_p9 = pneg %p1536_p8  ;;  %s24_s26 = ssub.s32 %s1465_s15, %s1552_s24 }
  0x11   : > { %s1337_s29 = scalar_lea.hbm %s1774_s1, 4608 }
  0x12   : > { %p1547_p11 = pnand %p1246_p9, %p1777_p1  ;;  %p1338_p12 = scmp.ne.s32.totalorder %s1774_s1, %s1337_s29 }
  0x13   : > { %p1344_p5 = scmp.lt.u32.totalorder %s1337_s29, %s1774_s1 }
  0x14   : > { %p1339_p13 = pneg %p1547_p11 }
  0x16   : > { %p1340_p0 = pnand %p1339_p13, %p1338_p12 }
  0x18   : > { %p1341_p3 = pneg %p1340_p0 }
  0x1a   : > { %p1346_p7 = pnand %p1344_p5, %p1341_p3 }
  0x1c   : > { %1349 = shalt.err (!%p1346_p7)
}
  0x1d   : > { %s1350_s7 = scalar_lea.vmem %s1540_s22, 4608  ;;  %p1358_p2 = scmp.lt.s32.totalorder %s1540_s22, %s1540_s22 }
  0x1e   : > { %p1351_p9 = scmp.ne.s32.totalorder %s1540_s22, %s1350_s7  ;;  %p1359_p6 = scmp.lt.s32.totalorder %s1350_s7, %s1350_s7 }
  0x20   : > { %p1353_p10 = pnand %p1351_p9, %p1339_p13  ;;  %p1360_p4 = por %p1359_p6, %p1358_p2 }
  0x22   : > { %p1354_p1 = pneg %p1353_p10 }
  0x24   : > { %p1361_p8 = pnand %p1360_p4, %p1354_p1 }
  0x26   : > { %1364 = shalt.err (!%p1361_p8)
}
  0x27   : > { %s1468_s8 = smov 64   ;;  %s1469_s9 = smov 4  }
  0x28   : > { %1249 = dma.hbm_to_vmem [thread:$0]  (!%p1547_p11), %s1774_s1, 4608, %s1540_s22, [#allocation6], %s1468_s8, %s1468_s8, %s1469_s9  }
  0x29   : > { %p25_p2 = scmp.eq.s32.totalorder %s24_s26, 0  ;;  %p34_p1 = scmp.ne.s32.totalorder %s1461_s14, %s1457_s13 }
  0x2a   : > { %p35_p4 = scmp.eq.s32.totalorder %s1465_s15, 0  ;;  %p1259_p6 = scmp.lt.s32.totalorder %s1465_s15, 2 }
  0x2b   : > { %s1583_s17 = scalar_select %p25_p2, %s1461_s14, %s27_s25  }
  0x2c   : > { %p36_p8 = por %p35_p4, %p34_p1  ;;  %p1784_p10 = scmp.eq.s32.totalorder %s1517_s16, 1 }
  0x2d   : > { %s148_s27 = sand.u32 1, %s1461_s14   ;;  %s1236_s28 = smul.u32 288, %s1465_s15 }
  0x2e   : > { %p1587_p12 = por %p1784_p10, %p34_p1  ;;  %s1235_s29 = smul.u32 18, %s148_s27 }
  0x2f   : > { %s1596_s4 = scalar_lea.hbm %s1773_s0, %s1236_s28  ;;  %p1598_p11 = pnand %p1259_p6, %p36_p8 }
  0x30   : > { %s152_s25 = scalar_lea.vmem [#allocation2], %s1235_s29  ;;  %s1604_s5 = scalar_lea.sflag [#allocation3], %s148_s27 }
  0x31   : > { %s159_s26 = sshll.u32 %s152_s25, 4  ;;  %s1365_s6 = scalar_lea.hbm %s1596_s4, 288  ;;  %s1602_s26 = int_to_ptr.vmem [resolvable:$true] %s159_s26 }
  0x32   : > { %p1366_p13 = scmp.ne.s32.totalorder %s1596_s4, %s1365_s6  ;;  %p1367_p0 = pneg %p1598_p11 }
  0x33   : > { %s1370_s9 = scalar_lea.hbm %s1773_s0, 576  ;;  %p1371_p7 = scmp.lt.u32.totalorder %s1596_s4, %s1773_s0 }
  0x34   : > { %p1368_p3 = pnand %p1367_p0, %p1366_p13  ;;  %p1372_p9 = scmp.lt.u32.totalorder %s1370_s9, %s1365_s6 }
  0x35   : > { %p1374_p1 = scmp.lt.u32.totalorder %s1365_s6, %s1596_s4 }
  0x36   : > { %p1369_p5 = pneg %p1368_p3  ;;  %p1373_p2 = por %p1372_p9, %p1371_p7 }
  0x38   : > { %p1375_p4 = por %p1374_p1, %p1373_p2 }
  0x3a   : > { %p1376_p6 = pnand %p1375_p4, %p1369_p5 }
  0x3c   : > { %1379 = shalt.err (!%p1376_p6)
}
  0x3d   : > { %s1380_s27 = scalar_lea.vmem %s1602_s26, 288  ;;  %s1470_s28 = smov [#allocation2]  }
  0x3e   : > { %p1381_p8 = scmp.ne.s32.totalorder %s1602_s26, %s1380_s27  ;;  %s1385_s29 = sshll.u32 %s1470_s28, 4  ;;  %s1386_s29 = int_to_ptr.vmem [resolvable:$false] %s1385_s29 }
  0x3f   : > { %s1387_s23 = scalar_lea.vmem %s1386_s29, 576  ;;  %p1388_p3 = scmp.lt.s32.totalorder %s1602_s26, %s1386_s29 }
  0x40   : > { %p1383_p10 = pnand %p1381_p8, %p1367_p0  ;;  %p1389_p7 = scmp.lt.s32.totalorder %s1387_s23, %s1380_s27 }
  0x42   : > { %p1384_p13 = pneg %p1383_p10  ;;  %p1390_p9 = por %p1389_p7, %p1388_p3 }
  0x44   : > { %p1391_p2 = pnand %p1390_p9, %p1384_p13 }
  0x46   : > { %1394 = shalt.err (!%p1391_p2)
}
  0x47   : > { %s1471_s30 = smov 32   ;;  %s1472_s25 = smov 2  }
  0x48   : > { %1253 = dma.hbm_to_vmem [thread:$0]  (!%p1598_p11), %s1596_s4, 288, %s1602_s26, %s1604_s5, %s1471_s30, %s1471_s30, %s1472_s25  }
  0x49   : > { %p1787_p0 = scmp.ne.s32.totalorder %s1782_s20, 0 }
  0x4a   : > { %s1635_s6 = sand.u32 (!%p1787_p0), 1, %s1457_s13   ;;  %p1788_p5 = scmp.ne.s32.totalorder (!%p1787_p0), %s1780_s18, 0 }
  0x4b   : > { %171 = sbr.rel (%p1787_p0) target bundleno = 398 (0x18e), region = 32  ;;  %s174_s8 = scalar_lea.sflag (!%p1787_p0), [#allocation3], %s1635_s6 }
  0x4c   : > { %s1237_s7 = smul.u32 (!%p1787_p0), 18, %s1635_s6 }
  0x4e   : > { %s1639_s9 = scalar_lea.vmem (!%p1787_p0), [#allocation2], %s1237_s7 }
  0x52   : > { %1440 = dma.done.wait (%p1788_p5), %s174_s8, 288  }
  0x53   : > { %1442 = vsyncadd (%p1788_p5), %s174_s8, 4294967008  ;;  %p1789_p11 = scmp.eq.s32.totalorder %s1517_s16, 0 }
  0x55   : > { %1444 = dma.done.wait (%p1789_p11), [#allocation6], 4608   ;;  %p1790_p1 = pmov %p1789_p11 }
  0x56   : > { %v1473_v0 = vmov 0.0   ;;  %vm1474_vm0 = vmmov 0   ;;  %v1301_v1 = vld [vmem:[#allocation5 + $0x20] sm:$0xff]   ;;  %v1303_v3 = vld [vmem:[#allocation5 + $0x28] sm:$0xff]   ;;  %v1305_v5 = vld [vmem:[#allocation5 + $0x30] sm:$0xff]   ;;  %vm249_vm1 = vcmask 523264  }
  0x57   : > { %1446 = vsyncadd (%p1790_p1), [#allocation6], 4294962688  ;;  %1127 = vmatprep.subr.bf16.mxu0 %v1473_v0  ;;  %1139 = vmatprep.subr.bf16.mxu1 %v1473_v0  ;;  %v1302_v2 = vld [vmem:[#allocation5] sm:$0xff]   ;;  %v1304_v4 = vld [vmem:[#allocation5 + $0x8] sm:$0xff]   ;;  %s1023_s18 = sshll.u32 %s1635_s6, 2  ;;  %s1079_s22 = sshll.u32 %s1517_s16, 6 }
  0x58   : > { %1135 = vmatprep.mubr.msk.bf16.mxu0 %vm1474_vm0, %v1473_v0  ;;  %1147 = vmatprep.mubr.msk.bf16.mxu1 %vm1474_vm0, %v1473_v0  ;;  %v1306_v6 = vld [vmem:[#allocation5 + $0x10] sm:$0xff]   ;;  %v1307_v7 = vld [vmem:[#allocation5 + $0x38] sm:$0xff]   ;;  %v1309_v11 = vld [vmem:[#allocation5 + $0x40] sm:$0xff]   ;;  %s203_s26 = scalar_lea.vmem [#allocation7], %s1023_s18  ;;  %s1729_s27 = scalar_lea.hbm %s1776_s3, %s1079_s22 }
  0x59   : > { %1128 = vmatpush3.bf16.msra.mxu0 %v1301_v1  ;;  %1140 = vmatpush3.bf16.msra.mxu1 %v1302_v2  ;;  %v1308_v8 = vld [vmem:[#allocation5 + $0x18] sm:$0xff]   ;;  %v1310_v12 = vld [vmem:[#allocation5 + $0x60] sm:$0xff]   ;;  %v1311_v13 = vld [vmem:[#allocation5 + $0x48] sm:$0xff]   ;;  %s936_s5 = sshll.u32 %s203_s26, 4  ;;  %s923_s28 = scalar_lea.sflag [#allocation4], %s1635_s6  ;;  %s1731_s5 = int_to_ptr.vmem [resolvable:$true] %s936_s5 }
  0x5a   : > { %1129 = vmatprep.subr.bf16.mxu0 %v1473_v0  ;;  %1141 = vmatprep.subr.bf16.mxu1 %v1473_v0  ;;  %v1024_v9 = vld [vmem:[%s1639_s9 + $0x2] sm:$0x3]  ;;  %v205_v10 = vld [vmem:[%s1639_s9] sm:$0x3]  ;;  %v1035_v19 = vld [vmem:[%s1639_s9 + $0x4] sm:$0x3] }
  0x5b   : > { %v1312_v14 = vld [vmem:[#allocation5 + $0x68] sm:$0xff]   ;;  %v1313_v15 = vld [vmem:[#allocation5 + $0x50] sm:$0xff]   ;;  %v1315_v17 = vld [vmem:[#allocation5 + $0x58] sm:$0xff]   ;;  %s1395_s16 = scalar_lea.vmem %s1731_s5, 64  ;;  %s1475_s29 = smov [#allocation7]  }
  0x5c   : > { %v1314_v16 = vld [vmem:[#allocation5 + $0x70] sm:$0xff]   ;;  %v1316_v18 = vld [vmem:[#allocation5 + $0x78] sm:$0xff]   ;;  %v1317_v20 = vld [vmem:[#allocation5 + $0x80] sm:$0xff]   ;;  %p1396_p4 = scmp.ne.s32.totalorder %s1731_s5, %s1395_s16  ;;  %s1399_s23 = sshll.u32 %s1475_s29, 4  ;;  %s1400_s23 = int_to_ptr.vmem [resolvable:$false] %s1399_s23 }
  0x5d   : > { %1130 = vmatpush3.bf16.msra.mxu0 %v1303_v3  ;;  %1142 = vmatpush3.bf16.msra.mxu1 %v1304_v4  ;;  %v1041_v21 = vld [vmem:[%s1639_s9 + $0x6] sm:$0x3]  ;;  %v1319_v23 = vld [vmem:[#allocation5 + $0x88] sm:$0xff]   ;;  %v1323_v27 = vld [vmem:[#allocation5 + $0x98] sm:$0xff]   ;;  %s1401_s30 = scalar_lea.vmem %s1400_s23, 128  ;;  %p1402_p10 = scmp.lt.s32.totalorder %s1731_s5, %s1400_s23 }
  0x5e   : > { %1131 = vmatprep.subr.bf16.mxu0 %v1473_v0  ;;  %1143 = vmatprep.subr.bf16.mxu1 %v1473_v0  ;;  %v1318_v22 = vld [vmem:[#allocation5 + $0xa0] sm:$0xff]   ;;  %v1320_v24 = vld [vmem:[#allocation5 + $0xa8] sm:$0xff]   ;;  %v1321_v25 = vld [vmem:[#allocation5 + $0x90] sm:$0xff]   ;;  %p1397_p6 = pnand %p1396_p4, %p1587_p12  ;;  %p1403_p13 = scmp.lt.s32.totalorder %s1401_s30, %s1395_s16 }
  0x5f   : > { %v1322_v26 = vld [vmem:[#allocation5 + $0xb0] sm:$0xff]   ;;  %v1324_v28 = vld [vmem:[#allocation5 + $0xb8] sm:$0xff]   ;;  %v1325_v30 = vld [vmem:[#allocation5 + $0xc0] sm:$0xff]  }
  0x60   : > { %v1047_v29 = vld [vmem:[%s1639_s9 + $0x8] sm:$0x3]  ;;  %v1053_v31 = vld [vmem:[%s1639_s9 + $0xa] sm:$0x3]  ;;  %v1327_v33 = vld [vmem:[#allocation5 + $0xc8] sm:$0xff]   ;;  %p1398_p8 = pneg %p1397_p6  ;;  %p1404_p3 = por %p1403_p13, %p1402_p10 }
  0x61   : > { %1132 = vmatpush3.bf16.msra.mxu0 %v1305_v5  ;;  %1144 = vmatpush3.bf16.msra.mxu1 %v1306_v6  ;;  %v1326_v32 = vld [vmem:[#allocation5 + $0xe0] sm:$0xff]   ;;  %v1328_v34 = vld [vmem:[#allocation5 + $0xe8] sm:$0xff]   ;;  %v1329_v35 = vld [vmem:[#allocation5 + $0xd0] sm:$0xff]  }
  0x62   : > { %1133 = vmatprep.subr.bf16.mxu0 %v1473_v0  ;;  %1145 = vmatprep.subr.bf16.mxu1 %v1473_v0  ;;  %v1330_v36 = vld [vmem:[#allocation5 + $0xf0] sm:$0xff]   ;;  %v1331_v37 = vld [vmem:[#allocation5 + $0xd8] sm:$0xff]   ;;  %v1333_v40 = vld [vmem:[#allocation5 + $0x100] sm:$0xff]   ;;  %p1405_p7 = pnand %p1404_p3, %p1398_p8 }
  0x63   : > { %v1332_v38 = vld [vmem:[#allocation5 + $0xf8] sm:$0xff]   ;;  %v1334_v42 = vld [vmem:[#allocation5 + $0x108] sm:$0xff]   ;;  %v1335_v43 = vld [vmem:[#allocation5 + $0x110] sm:$0xff]  }
  0x64   : > { %v1059_v39 = vld [vmem:[%s1639_s9 + $0xc] sm:$0x3]  ;;  %v1065_v41 = vld [vmem:[%s1639_s9 + $0xe] sm:$0x3]  ;;  %v1071_v45 = vld [vmem:[%s1639_s9 + $0x10] sm:$0x3] }
  0x65   : > { %1134 = vmatpush3.bf16.msra.mxu0 %v1307_v7  ;;  %1146 = vmatpush3.bf16.msra.mxu1 %v1308_v8  ;;  %v1336_v44 = vld [vmem:[#allocation5 + $0x118] sm:$0xff]  }
  0x66   : > { %1151 = vmatprep.subr.bf16.mxu0 %v1473_v0  ;;  %1163 = vmatprep.subr.bf16.mxu1 %v1473_v0 }
  0x68   : > { %1136 = vmatmul.mubr.msk.bf16.vlgmr.msra.gmra.mrb[0].mxu0 %vm249_vm1, %v1024_v9  ;;  %1148 = vmatmul.mubr.msk.bf16.vlgmr.msra.gmra.mrb[0].mxu1 %vm249_vm1, %v205_v10 }
  0x69   : > { %1152 = vmatpush3.bf16.msra.mxu0 %v1309_v11  ;;  %1164 = vmatpush3.bf16.msra.mxu1 %v1310_v12 }
  0x6a   : > { %1153 = vmatprep.subr.bf16.mxu0 %v1473_v0  ;;  %1165 = vmatprep.subr.bf16.mxu1 %v1473_v0 }
  0x6b   : > { %1159 = vmatprep.mubr.msk.bf16.mxu0 %vm1474_vm0, %v1473_v0  ;;  %1171 = vmatprep.mubr.msk.bf16.mxu1 %vm1474_vm0, %v1473_v0 }
  0x6d   : > { %1154 = vmatpush3.bf16.msra.mxu0 %v1311_v13  ;;  %1166 = vmatpush3.bf16.msra.mxu1 %v1312_v14 }
  0x6e   : > { %1155 = vmatprep.subr.bf16.mxu0 %v1473_v0  ;;  %1167 = vmatprep.subr.bf16.mxu1 %v1473_v0 }
  0x71   : > { %1156 = vmatpush3.bf16.msra.mxu0 %v1313_v15  ;;  %1168 = vmatpush3.bf16.msra.mxu1 %v1314_v16 }
  0x72   : > { %1157 = vmatprep.subr.bf16.mxu0 %v1473_v0  ;;  %1169 = vmatprep.subr.bf16.mxu1 %v1473_v0 }
  0x75   : > { %1158 = vmatpush3.bf16.msra.mxu0 %v1315_v17  ;;  %1170 = vmatpush3.bf16.msra.mxu1 %v1316_v18 }
  0x76   : > { %1175 = vmatprep.subr.bf16.mxu0 %v1473_v0  ;;  %1187 = vmatprep.subr.bf16.mxu1 %v1473_v0 }
  0x78   : > { %1160 = vmatmul.mubr.msk.bf16.vlgmr.msra.gmra.mrb[4].mxu0 %vm249_vm1, %v1035_v19  ;;  %1172 = vmatmul.mubr.msk.bf16.vlgmr.msra.gmra.mrb[4].mxu1 %vm249_vm1, %v1041_v21 }
  0x79   : > { %1176 = vmatpush3.bf16.msra.mxu0 %v1317_v20  ;;  %1188 = vmatpush3.bf16.msra.mxu1 %v1318_v22  ;;  %v1077_v22 = vld [vmem:[%s1775_s2] ss:$0 sm:$0xff] }
  0x7a   : > { %1177 = vmatprep.subr.bf16.mxu0 %v1473_v0  ;;  %1189 = vmatprep.subr.bf16.mxu1 %v1473_v0 }
  0x7b   : > { %1183 = vmatprep.mubr.msk.bf16.mxu0 %vm1474_vm0, %v1473_v0  ;;  %1195 = vmatprep.mubr.msk.bf16.mxu1 %vm1474_vm0, %v1473_v0 }
  0x7d   : > { %1178 = vmatpush3.bf16.msra.mxu0 %v1319_v23  ;;  %1190 = vmatpush3.bf16.msra.mxu1 %v1320_v24 }
  0x7e   : > { %1179 = vmatprep.subr.bf16.mxu0 %v1473_v0  ;;  %1191 = vmatprep.subr.bf16.mxu1 %v1473_v0 }
  0x81   : > { %1180 = vmatpush3.bf16.msra.mxu0 %v1321_v25  ;;  %1192 = vmatpush3.bf16.msra.mxu1 %v1322_v26 }
  0x82   : > { %1181 = vmatprep.subr.bf16.mxu0 %v1473_v0  ;;  %1193 = vmatprep.subr.bf16.mxu1 %v1473_v0 }
  0x85   : > { %1182 = vmatpush3.bf16.msra.mxu0 %v1323_v27  ;;  %1194 = vmatpush3.bf16.msra.mxu1 %v1324_v28 }
  0x86   : > { %1199 = vmatprep.subr.bf16.mxu0 %v1473_v0  ;;  %1211 = vmatprep.subr.bf16.mxu1 %v1473_v0 }
  0x88   : > { %1184 = vmatmul.mubr.msk.bf16.vlgmr.msra.gmra.mrb[8].mxu0 %vm249_vm1, %v1047_v29  ;;  %1196 = vmatmul.mubr.msk.bf16.vlgmr.msra.gmra.mrb[8].mxu1 %vm249_vm1, %v1053_v31 }
  0x89   : > { %1200 = vmatpush3.bf16.msra.mxu0 %v1325_v30  ;;  %1212 = vmatpush3.bf16.msra.mxu1 %v1326_v32 }
  0x8a   : > { %1201 = vmatprep.subr.bf16.mxu0 %v1473_v0  ;;  %1213 = vmatprep.subr.bf16.mxu1 %v1473_v0 }
  0x8b   : > { %1207 = vmatprep.mubr.msk.bf16.mxu0 %vm1474_vm0, %v1473_v0  ;;  %1219 = vmatprep.mubr.msk.bf16.mxu1 %vm1474_vm0, %v1473_v0 }
  0x8d   : > { %1202 = vmatpush3.bf16.msra.mxu0 %v1327_v33  ;;  %1214 = vmatpush3.bf16.msra.mxu1 %v1328_v34 }
  0x8e   : > { %1203 = vmatprep.subr.bf16.mxu0 %v1473_v0  ;;  %1215 = vmatprep.subr.bf16.mxu1 %v1473_v0 }
  0x91   : > { %1204 = vmatpush3.bf16.msra.mxu0 %v1329_v35  ;;  %1216 = vmatpush3.bf16.msra.mxu1 %v1330_v36 }
  0x92   : > { %1205 = vmatprep.subr.bf16.mxu0 %v1473_v0  ;;  %1217 = vmatprep.subr.bf16.mxu1 %v1473_v0 }
  0x95   : > { %1206 = vmatpush3.bf16.msra.mxu0 %v1331_v37  ;;  %1218 = vmatpush3.bf16.msra.mxu1 %v1332_v38 }
  0x96   : > { %1223 = vmatprep.subr.bf16.mxu0 %v1473_v0 }
  0x98   : > { %1208 = vmatmul.mubr.msk.bf16.vlgmr.msra.gmra.mrb[12].mxu0 %vm249_vm1, %v1059_v39  ;;  %1220 = vmatmul.mubr.msk.bf16.vlgmr.msra.gmra.mrb[12].mxu1 %vm249_vm1, %v1065_v41 }
  0x99   : > { %1224 = vmatpush3.bf16.msra.mxu0 %v1333_v40  ;;  %1231 = vmatprep.mubr.msk.bf16.mxu0 %vm1474_vm0, %v1473_v0 }
  0x9a   : > { %1225 = vmatprep.subr.bf16.mxu0 %v1473_v0 }
  0x9d   : > { %1226 = vmatpush3.bf16.msra.mxu0 %v1334_v42 }
  0x9e   : > { %1227 = vmatprep.subr.bf16.mxu0 %v1473_v0 }
  0xa1   : > { %1228 = vmatpush3.bf16.msra.mxu0 %v1335_v43 }
  0xa2   : > { %1229 = vmatprep.subr.bf16.mxu0 %v1473_v0 }
  0xa5   : > { %1230 = vmatpush3.bf16.msra.mxu0 %v1336_v44 }
  0xa8   : > { %1232 = vmatmul.mubr.msk.bf16.vlgmr.msra.gmra.mrb[16].mxu0 %vm249_vm1, %v1071_v45 }
 0x13b   : > { %v287_v46 = vpop.f32.mrb[0].mxu0  ;;  %v354_v48 = vpop.f32.mrb[0].mxu1 }
 0x13c   : > { %v1137_v47 = vpop.f32.mrb[1].mxu0  ;;  %v355_v49 = vadd.f32 %v354_v48, %v287_v46  ;;  %v1149_v51 = vpop.f32.mrb[1].mxu1 }
 0x13d   : > { %v290_v50 = vpop.f32.mrb[2].mxu0  ;;  %v357_v53 = vpop.f32.mrb[2].mxu1 }
 0x13e   : > { %v1138_v52 = vpop.f32.mrb[3].mxu0  ;;  %v1150_v54 = vpop.f32.mrb[3].mxu1 }
 0x14b   : > { %v432_v55 = vpop.f32.mrb[4].mxu0  ;;  %v511_v58 = vpop.f32.mrb[4].mxu1 }
 0x14c   : > { %v438_v56 = vadd.f32 %v432_v55, %v355_v49  ;;  %v1161_v57 = vpop.f32.mrb[5].mxu0  ;;  %v1173_v60 = vpop.f32.mrb[5].mxu1 }
 0x14d   : > { %v435_v59 = vpop.f32.mrb[6].mxu0  ;;  %v514_v63 = vpop.f32.mrb[6].mxu1 }
 0x14e   : > { %v517_v61 = vadd.f32 %v511_v58, %v438_v56  ;;  %v1162_v62 = vpop.f32.mrb[7].mxu0  ;;  %v1174_v0 = vpop.f32.mrb[7].mxu1 }
 0x15b   : > { %v590_v1 = vpop.f32.mrb[8].mxu0  ;;  %v669_v4 = vpop.f32.mrb[8].mxu1 }
 0x15c   : > { %v596_v2 = vadd.f32 %v590_v1, %v517_v61  ;;  %v1185_v3 = vpop.f32.mrb[9].mxu0  ;;  %v1197_v6 = vpop.f32.mrb[9].mxu1 }
 0x15d   : > { %v593_v5 = vpop.f32.mrb[10].mxu0  ;;  %v672_v9 = vpop.f32.mrb[10].mxu1 }
 0x15e   : > { %v675_v7 = vadd.f32 %v669_v4, %v596_v2  ;;  %v1186_v8 = vpop.f32.mrb[11].mxu0  ;;  %v1198_v10 = vpop.f32.mrb[11].mxu1 }
 0x16b   : > { %v748_v11 = vpop.f32.mrb[12].mxu0  ;;  %v827_v14 = vpop.f32.mrb[12].mxu1 }
 0x16c   : > { %v754_v12 = vadd.f32 %v748_v11, %v675_v7  ;;  %v1209_v13 = vpop.f32.mrb[13].mxu0  ;;  %v1221_v16 = vpop.f32.mrb[13].mxu1 }
 0x16d   : > { %v751_v15 = vpop.f32.mrb[14].mxu0  ;;  %v830_v19 = vpop.f32.mrb[14].mxu1 }
 0x16e   : > { %v833_v17 = vadd.f32 %v827_v14, %v754_v12  ;;  %v1210_v18 = vpop.f32.mrb[15].mxu0  ;;  %v1222_v20 = vpop.f32.mrb[15].mxu1 }
 0x17b   : > { %v906_v21 = vpop.f32.mrb[16].mxu0 }
 0x17c   : > { %v912_v23 = vadd.f32 %v906_v21, %v833_v17  ;;  %v1233_v24 = vpop.f32.mrb[17].mxu0 }
 0x17d   : > { %v909_v25 = vpop.f32.mrb[18].mxu0 }
 0x17e   : > { %v920_v26 = vadd.f32 %v1077_v22, %v912_v23  ;;  %v1234_v27 = vpop.f32.mrb[19].mxu0 }
 0x180   : > { %921 = vst [vmem:[%s203_s26] sm:$0xf] %v920_v26 }
 0x181   : > { %1408 = shalt.err (!%p1405_p7)
}
 0x182   : > { %s1409_s25 = scalar_lea.hbm %s1729_s27, 64  ;;  %s1413_s8 = scalar_lea.hbm %s1776_s3, 128 }
 0x183   : > { %p1410_p9 = scmp.ne.s32.totalorder %s1729_s27, %s1409_s25  ;;  %p1414_p5 = scmp.lt.u32.totalorder %s1729_s27, %s1776_s3 }
 0x184   : > { %p1415_p11 = scmp.lt.u32.totalorder %s1413_s8, %s1409_s25  ;;  %p1417_p4 = scmp.lt.u32.totalorder %s1409_s25, %s1729_s27 }
 0x185   : > { %p1411_p2 = pnand %p1410_p9, %p1587_p12 }
 0x186   : > { %p1416_p1 = por %p1415_p11, %p1414_p5 }
 0x187   : > { %p1412_p0 = pneg %p1411_p2 }
 0x188   : > { %p1418_p6 = por %p1417_p4, %p1416_p1 }
 0x18a   : > { %p1419_p8 = pnand %p1418_p6, %p1412_p0 }
 0x18c   : > { %1422 = shalt.err (!%p1419_p8)
}
 0x18d   : > { %1244 = dma.vmem_to_hbm [thread:$0]  (%p1587_p12), %s1731_s5, 64, %s1729_s27, %s923_s28  }
 0x18e PF: > { %s948_s20 = sand.u32 1, %s1453_s12   ;;  %p1791_p10 = scmp.ne.s32.totalorder %s1781_s19, 0 }
 0x18f   : > { %p1792_p13 = scmp.ge.s32.totalorder %s1465_s15, 2  ;;  %s949_s4 = scalar_lea.sflag [#allocation4], %s948_s20 }
 0x191   : > { %p1255_p3 = pnand %p1792_p13, %p1791_p10 }
 0x193   : > { %1448 = dma.done.wait (!%p1255_p3), %s949_s4, 64  }
 0x194   : > { %1450 = vsyncadd (!%p1255_p3), %s949_s4, 4294967232  ;;  %p17_p7 = scmp.ge.s32.totalorder %s1552_s24, 4   ;;  %s1793_s12 = smov %s1457_s13 }
 0x195   : > { %s1794_s13 = smov %s1461_s14  ;;  %s1795_s14 = smov %s1583_s17 }
 0x196   : > { %s1796_s15 = smov %s1552_s24  ;;  %19 = sbr.rel (!%p17_p7) target bundleno = 6 (0x6), region = 97 }
 0x19d   :  { %954 = vsyncpa [#allocation3], 1 }
 0x19e   :  { %956 = vsyncpa [#allocation3 + $0x1], 1 }
 0x19f   :  { %957 = vsyncpa [#allocation6], 1 }
 0x1a0   :  { %958 = vsyncpa [#allocation4], 1 }
 0x1a1   :  { %960 = vsyncpa [#allocation4 + $0x1], 1 }

</bundles_post_ra>
